<compile_context>
chip_gen: v7x
topology: tpu7x:2x2x1
jax: 0.10.0
libtpu: 0.0.40
codegen_flags: <defaults>
</compile_context>

<pallas_src>
import functools

import jax
import jax.numpy as jnp
from jax import lax
from jax.experimental import pallas as pl
from jax.experimental.pallas import tpu as pltpu

EPS = 1e-5
_LANES = 128


def _layernorm_kernel(x_ref, g_ref, b_ref, o_ref):
    """Plain path: normalize over the full last dim of the tile."""
    xf = x_ref[...].astype(jnp.float32)                    # (block_rows, dim)
    inv_dim = jnp.float32(1.0 / xf.shape[-1])
    mean = jnp.sum(xf, axis=-1, keepdims=True) * inv_dim    # XLU reduce
    xc = xf - mean
    var = jnp.sum(xc * xc, axis=-1, keepdims=True) * inv_dim
    inv = lax.rsqrt(var + EPS)                               # EUP slot
    y = xc * inv * g_ref[...] + b_ref[...]
    o_ref[...] = y.astype(o_ref.dtype)


def _layernorm_packed_kernel(x_ref, g_ref, b_ref, o_ref, *, dim, k):
    """Packed path for dim < 128: each 128-wide lane row of the tile holds k
    independent rows of `dim` features.  Segment reductions / broadcasts use
    tiny 0/1 matmuls on the idle MXU, keeping all loads/stores lane-dense."""
    kd = k * dim
    xf = x_ref[...].astype(jnp.float32)                     # (block_rows, kd)
    inv_dim = jnp.float32(1.0 / dim)

    # S[l, s]  = 1 iff lane l belongs to segment s          (kd, k)
    # St[s, l] = 1 iff lane l belongs to segment s          (k, kd)
    lane = lax.broadcasted_iota(jnp.int32, (kd, k), 0)
    seg = lax.broadcasted_iota(jnp.int32, (kd, k), 1)
    lo = seg * dim
    S = jnp.logical_and(lane >= lo, lane < lo + dim).astype(jnp.float32)
    lane_t = lax.broadcasted_iota(jnp.int32, (k, kd), 1)
    seg_t = lax.broadcasted_iota(jnp.int32, (k, kd), 0)
    lo_t = seg_t * dim
    St = jnp.logical_and(lane_t >= lo_t, lane_t < lo_t + dim).astype(jnp.float32)

    dot = functools.partial(jnp.dot, precision=lax.Precision.HIGHEST,
                            preferred_element_type=jnp.float32)
    mean = dot(xf, S) * inv_dim                              # (block_rows, k)
    mean_f = dot(mean, St)                                   # (block_rows, kd)
    xc = xf - mean_f
    var = dot(xc * xc, S) * inv_dim                          # (block_rows, k)
    inv = lax.rsqrt(var + EPS)
    inv_f = dot(inv, St)                                     # (block_rows, kd)
    y = xc * inv_f * g_ref[...] + b_ref[...]
    o_ref[...] = y.astype(o_ref.dtype)


def _cdiv(a, b):
    return -(-a // b)


def _choose_block_rows(rows, dim_lanes, x_dtype, out_dtype, *, min_steps=4):
    """Pick (block_rows, vmem_limit_bytes) for the local TPU generation."""
    in_b = jnp.dtype(x_dtype).itemsize
    out_b = jnp.dtype(out_dtype).itemsize

    try:
        vmem_cap = int(getattr(pltpu.get_tpu_info(), "vmem_capacity_bytes",
                               64 * 1024 * 1024))
    except Exception:
        vmem_cap = 64 * 1024 * 1024          # conservative (v7x-sized) fallback

    # v5e/v6e (128 MiB): ~48 MiB stream budget / 96 MiB scoped limit.
    # v7x (64 MiB):      ~32 MiB stream budget / 48 MiB scoped limit.
    budget = min(vmem_cap // 2, 48 * 1024 * 1024)
    vmem_limit = min((vmem_cap * 3) // 4, 96 * 1024 * 1024)

    # Double-buffered in/out streams + ~5 f32-wide full-tile temporaries
    # + ~3 lane-padded narrow (block_rows, 1..k) f32 intermediates.
    per_row_bytes = dim_lanes * (2 * (in_b + out_b) + 5 * 4) + 3 * 4 * _LANES

    # Sublane packing: 8 rows for 32-bit, 16 for 16-bit, 32 for 8-bit dtypes.
    mult = max(8, 32 // max(1, min(in_b, out_b)))

    br = max(mult, budget // per_row_bytes)
    br = min(br, 8192)
    # Keep the grid >= min_steps whenever rows permit: a multi-step grid is
    # required for DMA/compute overlap and for splitting the row grid across
    # v7x's two TensorCores without gross imbalance.
    br = min(br, max(mult, _cdiv(_cdiv(rows, min_steps), mult) * mult))
    if br >= rows:
        br = rows          # one exact block; block == full array dim is legal
    else:
        br = max(mult, (br // mult) * mult)
    return int(br), int(vmem_limit)


def layer_norm(x, gamma, beta, *, block_rows=None):
    """LayerNorm over the last axis of x, matching F.layer_norm(x, (dim,), gamma, beta)."""
    orig_shape = x.shape
    dim = orig_shape[-1]
    rows = 1
    for s in orig_shape[:-1]:
        rows *= s

    # Cast params to f32 once, outside the kernel (no per-step cast).
    g = gamma.astype(jnp.float32).reshape((dim,))
    b = beta.astype(jnp.float32).reshape((dim,))

    # Lane-dense packing for narrow dims (free, pure-view reshape).
    k = 1
    if dim < _LANES and _LANES % dim == 0 and rows % (_LANES // dim) == 0:
        k = _LANES // dim
    kd = k * dim
    rows_k = rows // k

    x2 = x.reshape(rows_k, kd)
    if k > 1:
        g2 = jnp.tile(g, (k,)).reshape(1, kd)
        b2 = jnp.tile(b, (k,)).reshape(1, kd)
        kernel = functools.partial(_layernorm_packed_kernel, dim=dim, k=k)
    else:
        g2 = g.reshape(1, kd)
        b2 = b.reshape(1, kd)
        kernel = _layernorm_kernel

    auto_rows, vmem_limit = _choose_block_rows(rows_k, kd, x.dtype, x.dtype)
    if block_rows is None:
        block_rows = auto_rows

    grid = (pl.cdiv(rows_k, block_rows),)
    out = pl.pallas_call(
        kernel,
        out_shape=jax.ShapeDtypeStruct((rows_k, kd), x.dtype),
        grid_spec=pltpu.PrefetchScalarGridSpec(
            num_scalar_prefetch=0,
            grid=grid,
            in_specs=[
                pl.BlockSpec((block_rows, kd), lambda i: (i, 0)),
                pl.BlockSpec((1, kd), lambda i: (0, 0)),
                pl.BlockSpec((1, kd), lambda i: (0, 0)),
            ],
            out_specs=pl.BlockSpec((block_rows, kd), lambda i: (i, 0)),
        ),
        compiler_params=pltpu.CompilerParams(
            dimension_semantics=("parallel",),
            vmem_limit_bytes=vmem_limit,
        ),
    )(x2, g2, b2)

    return out.reshape(orig_shape)


def _reference(x, gamma, beta):
    mean = jnp.mean(x, axis=-1, keepdims=True)
    var = jnp.mean((x - mean) ** 2, axis=-1, keepdims=True)
    return (x - mean) / jnp.sqrt(var + EPS) * gamma + beta


if __name__ == "__main__":
    key = jax.random.PRNGKey(0)
    batch, seq, hidden = 2, 8, 32

    x = jax.random.normal(key, (batch, seq, hidden), dtype=jnp.float32)

    # Matches nn.Parameter(torch.ones(dim)) and register_buffer('beta', zeros(dim)).
    gamma = jnp.ones((hidden,), dtype=jnp.float32)
    beta = jnp.zeros((hidden,), dtype=jnp.float32)

    # 1) dim=32 < 128 with rows divisible by k=4 -> lane-dense packed path.
    y = jax.block_until_ready(layer_norm(x, gamma, beta))
    ref = _reference(x, gamma, beta)
    assert jnp.allclose(y, ref, atol=1e-4, rtol=1e-4), "mismatch (packed path)"

    # 2) Ragged rows (15 % 4 != 0) -> plain path with a masked boundary block.
    x2 = jax.random.normal(jax.random.PRNGKey(1), (3, 5, hidden), dtype=jnp.float32)
    y2 = jax.block_until_ready(layer_norm(x2, gamma, beta))
    ref2 = _reference(x2, gamma, beta)
    assert jnp.allclose(y2, ref2, atol=1e-4, rtol=1e-4), "mismatch (ragged rows)"

    # 3) dim already a lane multiple -> plain path, lane-dense stores.
    x3 = jax.random.normal(jax.random.PRNGKey(2), (4, 6, 128), dtype=jnp.float32)
    g3 = jax.random.normal(jax.random.PRNGKey(3), (128,), dtype=jnp.float32)
    b3 = jax.random.normal(jax.random.PRNGKey(4), (128,), dtype=jnp.float32)
    y3 = jax.block_until_ready(layer_norm(x3, g3, b3))
    ref3 = _reference(x3, g3, b3)
    assert jnp.allclose(y3, ref3, atol=1e-4, rtol=1e-4), "mismatch (dim=128)"

    print("KERNEL_OK")
</pallas_src>

<mosaic_0001>
module attributes {stable_mosaic.version = 11 : i64} {
  func.func @_layernorm_packed_kernel(%arg0: i32, %arg1: memref<4x128xf32, #tpu.memory_space<vmem>>, %arg2: memref<1x128xf32, #tpu.memory_space<vmem>>, %arg3: memref<1x128xf32, #tpu.memory_space<vmem>>, %arg4: memref<4x128xf32, #tpu.memory_space<vmem>>) attributes {dimension_semantics = [#tpu.dimension_semantics<parallel>], iteration_bounds = array<i64: 1>, scalar_prefetch = 0 : i64, scratch_operands = 0 : i64, tpu.core_type = #tpu.core_type<tc>, window_params = [{transform_indices = @transform_0, window_bounds = array<i64: 4, 128>}, {pipeline_mode = #tpu.pipeline_mode<synchronous>, transform_indices = @transform_1, window_bounds = array<i64: 1, 128>}, {pipeline_mode = #tpu.pipeline_mode<synchronous>, transform_indices = @transform_2, window_bounds = array<i64: 1, 128>}, {transform_indices = @transform_3, window_bounds = array<i64: 4, 128>}]} {
    %c0 = arith.constant 0 : index
    %c0_0 = arith.constant 0 : index
    %0 = vector.load %arg1[%c0, %c0_0] : memref<4x128xf32, #tpu.memory_space<vmem>>, vector<4x128xf32>
    %1 = tpu.iota {dimensions = array<i32: 0>} : vector<128x4xi32>
    %2 = tpu.iota {dimensions = array<i32: 1>} : vector<128x4xi32>
    %c32_i32 = arith.constant 32 : i32
    %3 = vector.broadcast %c32_i32 : i32 to vector<128x4xi32>
    %4 = arith.muli %2, %3 : vector<128x4xi32>
    %5 = arith.cmpi sge, %1, %4 : vector<128x4xi32>
    %c32_i32_1 = arith.constant 32 : i32
    %6 = vector.broadcast %c32_i32_1 : i32 to vector<128x4xi32>
    %7 = arith.addi %4, %6 : vector<128x4xi32>
    %8 = arith.cmpi slt, %1, %7 : vector<128x4xi32>
    %9 = arith.andi %5, %8 : vector<128x4xi1>
    %10 = arith.extui %9 : vector<128x4xi1> to vector<128x4xi32>
    %11 = arith.sitofp %10 : vector<128x4xi32> to vector<128x4xf32>
    %12 = tpu.iota {dimensions = array<i32: 1>} : vector<4x128xi32>
    %13 = tpu.iota {dimensions = array<i32: 0>} : vector<4x128xi32>
    %c32_i32_2 = arith.constant 32 : i32
    %14 = vector.broadcast %c32_i32_2 : i32 to vector<4x128xi32>
    %15 = arith.muli %13, %14 : vector<4x128xi32>
    %16 = arith.cmpi sge, %12, %15 : vector<4x128xi32>
    %c32_i32_3 = arith.constant 32 : i32
    %17 = vector.broadcast %c32_i32_3 : i32 to vector<4x128xi32>
    %18 = arith.addi %15, %17 : vector<4x128xi32>
    %19 = arith.cmpi slt, %12, %18 : vector<4x128xi32>
    %20 = arith.andi %16, %19 : vector<4x128xi1>
    %21 = arith.extui %20 : vector<4x128xi1> to vector<4x128xi32>
    %22 = arith.sitofp %21 : vector<4x128xi32> to vector<4x128xf32>
    %cst = arith.constant dense<0.000000e+00> : vector<4x4xf32>
    %23 = tpu.matmul %0, %11, %cst {dimension_numbers = #tpu.dot_dimension_numbers<[1], [0], [0], [1], [0, 0, 1, 1], [], []>, precision = #tpu.contract_precision<fp32>} : vector<4x128xf32>, vector<128x4xf32>, vector<4x4xf32> -> vector<4x4xf32>
    %cst_4 = arith.constant 3.125000e-02 : f32
    %24 = vector.broadcast %cst_4 : f32 to vector<4x4xf32>
    %25 = arith.mulf %23, %24 : vector<4x4xf32>
    %cst_5 = arith.constant dense<0.000000e+00> : vector<4x128xf32>
    %26 = tpu.matmul %25, %22, %cst_5 {dimension_numbers = #tpu.dot_dimension_numbers<[1], [0], [0], [1], [0, 0, 1, 1], [], []>, precision = #tpu.contract_precision<fp32>} : vector<4x4xf32>, vector<4x128xf32>, vector<4x128xf32> -> vector<4x128xf32>
    %27 = arith.subf %0, %26 : vector<4x128xf32>
    %28 = arith.mulf %27, %27 : vector<4x128xf32>
    %cst_6 = arith.constant dense<0.000000e+00> : vector<4x4xf32>
    %29 = tpu.matmul %28, %11, %cst_6 {dimension_numbers = #tpu.dot_dimension_numbers<[1], [0], [0], [1], [0, 0, 1, 1], [], []>, precision = #tpu.contract_precision<fp32>} : vector<4x128xf32>, vector<128x4xf32>, vector<4x4xf32> -> vector<4x4xf32>
    %cst_7 = arith.constant 3.125000e-02 : f32
    %30 = vector.broadcast %cst_7 : f32 to vector<4x4xf32>
    %31 = arith.mulf %29, %30 : vector<4x4xf32>
    %cst_8 = arith.constant 9.99999974E-6 : f32
    %32 = vector.broadcast %cst_8 : f32 to vector<4x4xf32>
    %33 = arith.addf %31, %32 : vector<4x4xf32>
    %34 = math.rsqrt %33 : vector<4x4xf32>
    %cst_9 = arith.constant dense<0.000000e+00> : vector<4x128xf32>
    %35 = tpu.matmul %34, %22, %cst_9 {dimension_numbers = #tpu.dot_dimension_numbers<[1], [0], [0], [1], [0, 0, 1, 1], [], []>, precision = #tpu.contract_precision<fp32>} : vector<4x4xf32>, vector<4x128xf32>, vector<4x128xf32> -> vector<4x128xf32>
    %36 = arith.mulf %27, %35 : vector<4x128xf32>
    %c0_10 = arith.constant 0 : index
    %c0_11 = arith.constant 0 : index
    %37 = vector.load %arg2[%c0_10, %c0_11] : memref<1x128xf32, #tpu.memory_space<vmem>>, vector<1x128xf32>
    %38 = vector.broadcast %37 : vector<1x128xf32> to vector<4x128xf32>
    %39 = arith.mulf %36, %38 : vector<4x128xf32>
    %c0_12 = arith.constant 0 : index
    %c0_13 = arith.constant 0 : index
    %40 = vector.load %arg3[%c0_12, %c0_13] : memref<1x128xf32, #tpu.memory_space<vmem>>, vector<1x128xf32>
    %41 = vector.broadcast %40 : vector<1x128xf32> to vector<4x128xf32>
    %42 = arith.addf %39, %41 : vector<4x128xf32>
    %c0_14 = arith.constant 0 : index
    %c0_15 = arith.constant 0 : index
    %43 = vector.load %arg4[%c0_14, %c0_15] : memref<4x128xf32, #tpu.memory_space<vmem>>, vector<4x128xf32>
    tpu.vector_store %arg4[%c0_14, %c0_15], %42 {strides = array<i32>} : memref<4x128xf32, #tpu.memory_space<vmem>>, vector<4x128xf32>,
    return
  }
  func.func @transform_0(%arg0: i32) -> (i32, i32) {
    %c0_i32 = arith.constant 0 : i32
    %c0_i32_0 = arith.constant 0 : i32
    return %arg0, %c0_i32 : i32, i32
  }
  func.func @transform_1(%arg0: i32) -> (i32, i32) {
    %c0_i32 = arith.constant 0 : i32
    %c0_i32_0 = arith.constant 0 : i32
    %c0_i32_1 = arith.constant 0 : i32
    return %c0_i32, %c0_i32_0 : i32, i32
  }
  func.func @transform_2(%arg0: i32) -> (i32, i32) {
    %c0_i32 = arith.constant 0 : i32
    %c0_i32_0 = arith.constant 0 : i32
    %c0_i32_1 = arith.constant 0 : i32
    return %c0_i32, %c0_i32_0 : i32, i32
  }
  func.func @transform_3(%arg0: i32) -> (i32, i32) {
    %c0_i32 = arith.constant 0 : i32
    %c0_i32_0 = arith.constant 0 : i32
    return %arg0, %c0_i32 : i32, i32
  }
}

</mosaic_0001>

<bundles_post_ra>
// kernel: tpu_custom_call.1
= control target key start
LH: loop header
LB: loop body
LE: loop exit
PB: predicated region body
PF: predicated region fallthrough
CT: control target
= control target key end

     0   :  { %8 = vsyncpa [#allocation3], 0  ;;  %s4434_s0 = inlined_call_operand.hbm [shape: f32[4,128], index: 0, kind: input, shape index: {}]   ;;  %s4435_s1 = inlined_call_operand.vmem [shape: f32[1,128], index: 1, kind: input, shape index: {}]   ;;  %s4436_s2 = inlined_call_operand.vmem [shape: f32[1,128], index: 2, kind: input, shape index: {}]   ;;  %s4437_s3 = inlined_call_operand.hbm [shape: f32[4,128], index: 3, kind: output, shape index: {}]  }
   0x1   :  { %9 = vsyncpa [#allocation4], 0  ;;  %s3573_s12 = smov [#allocation2]   ;;  %s3525_s16 = scalar_lea.hbm %s4434_s0, 64 }
   0x2   :  { %s16_s13 = sshll.u32 %s3573_s12, 4  ;;  %p3526_p0 = scmp.ne.s32.totalorder %s4434_s0, %s3525_s16  ;;  %s17_s13 = int_to_ptr.vmem [resolvable:$true] %s16_s13 }
   0x3   :  { %p3529_p1 = scmp.lt.u32.totalorder %s3525_s16, %s4434_s0 }
   0x5   :  { %p3531_p2 = pnand %p3529_p1, %p3526_p0 }
   0x7   :  { %3534 = shalt.err (!%p3531_p2)
}
   0x8   :  { %s3535_s21 = scalar_lea.vmem %s17_s13, 64  ;;  %p3540_p4 = scmp.lt.s32.totalorder %s17_s13, %s17_s13 }
   0x9   :  { %p3536_p3 = scmp.ne.s32.totalorder %s17_s13, %s3535_s21  ;;  %p3541_p5 = scmp.lt.s32.totalorder %s3535_s21, %s3535_s21 }
   0xb   :  { %p3542_p6 = por %p3541_p5, %p3540_p4 }
   0xd   :  { %p3543_p7 = pnand %p3542_p6, %p3536_p3 }
   0xf   :  { %3546 = shalt.err (!%p3543_p7)
}
  0x10   :  { %19 = dma.hbm_to_vmem [thread:$0]  %s4434_s0, 64, %s17_s13, [#allocation3]   ;;  %v28_v0 = vlaneseq }
  0x11   :  { %3569 = dma.done.wait [#allocation3], 64  }
  0x12   :  { %3570 = vsyncadd [#allocation3], 4294967232  ;;  %v3574_v1 = vmov 0.0|0.0   ;;  %v3575_v2 = vmov 0.0   ;;  %v3613_v3 = vshrl.u32 %v28_v0, 7  ;;  %v3615_v4 = vand.u32 127, %v28_v0 }
  0x13   :  { %3189 = vmatprep.subr.bf16.mxu0 %v3574_v1  ;;  %2919 = vmatprep.subr.mxu1 %v3575_v2  ;;  %vm4438_vm0 = vmmov 0   ;;  %v4452_v14 = vmov 0  ;;  %v3577_v16 = vmov 1.0|1.0   ;;  %v4458_v20 = vmov 0  ;;  %s3578_s27 = smov [#allocation5]  }
  0x14   :  { %2741 = vmatprep.mubr.msk.f32.mxu0 %vm4438_vm0, %v3575_v2  ;;  %2921 = vmatprep.mubr.msk.f32.mxu1 %vm4438_vm0, %v3575_v2  ;;  %v30_v5 = vadd.s32 8, %v3613_v3  ;;  %v3623_v6 = vmul.u32 32, %v3615_v4  ;;  %v31_v7 = vadd.s32 16, %v3613_v3  ;;  %v32_v9 = vadd.s32 24, %v3613_v3  ;;  %v3713_v27 = vld [vmem:[#allocation2] sm:$0xf] }
  0x15   :  { %v33_v10 = vadd.s32 32, %v3613_v3  ;;  %v34_v12 = vadd.s32 40, %v3613_v3  ;;  %v35_v15 = vadd.s32 48, %v3613_v3  ;;  %v36_v18 = vadd.s32 56, %v3613_v3  ;;  %s2351_s28 = sshll.u32 %s3578_s27, 4  ;;  %s2352_s28 = int_to_ptr.vmem [resolvable:$true] %s2351_s28 }
  0x16   :  { %vm48_vm1 = vcmp.ge.s32.totalorder %v3613_v3, %v3623_v6  ;;  %v3629_v8 = vadd.s32 32, %v3623_v6  ;;  %vm49_vm2 = vcmp.ge.s32.totalorder %v30_v5, %v3623_v6  ;;  %vm50_vm6 = vcmp.ge.s32.totalorder %v31_v7, %v3623_v6  ;;  %s3547_s29 = scalar_lea.vmem %s2352_s28, 64  ;;  %p3552_p9 = scmp.lt.s32.totalorder %s2352_s28, %s2352_s28 }
  0x17   :  { %vm51_vm9 = vcmp.ge.s32.totalorder %v32_v9, %v3623_v6  ;;  %vm52_vm13 = vcmp.ge.s32.totalorder %v33_v10, %v3623_v6  ;;  %v37_v21 = vadd.s32 64, %v3613_v3  ;;  %v38_v23 = vadd.s32 72, %v3613_v3  ;;  %p3548_p8 = scmp.ne.s32.totalorder %s2352_s28, %s3547_s29  ;;  %p3553_p10 = scmp.lt.s32.totalorder %s3547_s29, %s3547_s29 }
  0x18   :  { %vm65_vm3 = vcmp.lt.s32.totalorder %v3613_v3, %v3629_v8  ;;  %vm66_vm4 = vcmp.lt.s32.totalorder %v30_v5, %v3629_v8  ;;  %vm67_vm7 = vcmp.lt.s32.totalorder %v31_v7, %v3629_v8  ;;  %vm68_vm10 = vcmp.lt.s32.totalorder %v32_v9, %v3629_v8 }
  0x19   :  { %vm3637_vm5 = vmand %vm48_vm1, %vm65_vm3  ;;  %vm69_vm14 = vcmp.lt.s32.totalorder %v33_v10, %v3629_v8  ;;  %vm53_vm1 = vcmp.ge.s32.totalorder %v34_v12, %v3623_v6  ;;  %v4464_v26 = vmov 0  ;;  %v39_v29 = vadd.s32 80, %v3613_v3  ;;  %p3554_p11 = por %p3553_p10, %p3552_p9 }
  0x1a   :  { %vm3644_vm8 = vmand %vm49_vm2, %vm66_vm4  ;;  %vm70_vm2 = vcmp.lt.s32.totalorder %v34_v12, %v3629_v8  ;;  %v2360_v24 = vsel %vm3637_vm5, 1.0, %v3575_v2  ;;  %v40_v30 = vadd.s32 88, %v3613_v3  ;;  %v4470_v36 = vmov 0 }
  0x1b   :  { %vm3654_vm11 = vmpackc.low %vm3644_vm8, %vm3637_vm5  ;;  %v2361_v31 = vsel %vm3644_vm8, 1.0, %v3575_v2  ;;  %v3726_v32 = vsub.f32 %v2360_v24, %v2360_v24  ;;  %v41_v37 = vadd.s32 96, %v3613_v3  ;;  %v3753_v38 = vand.u32 4294901760, %v3713_v27  ;;  %p3555_p12 = pnand %p3554_p11, %p3548_p8 }
  0x1c   :  { %v4453_v14 = vsel %vm3654_vm11, 4294967295, %v4452_v14  ;;  %3191 = vmatpush3.bf16.msk.msra.mxu0 %vm3654_vm11, %v3577_v16  ;;  %vm3662_vm12 = vmand %vm50_vm6, %vm67_vm7  ;;  %vm54_vm6 = vcmp.ge.s32.totalorder %v35_v15, %v3623_v6  ;;  %vm71_vm7 = vcmp.lt.s32.totalorder %v35_v15, %v3629_v8  ;;  %v42_v40 = vadd.s32 104, %v3613_v3 }
  0x1d   :  { %3192 = vmatprep.subr.bf16.mxu0 %v3574_v1  ;;  %vm3670_vm15 = vmand %vm51_vm9, %vm68_vm10  ;;  %vm55_vm10 = vcmp.ge.s32.totalorder %v36_v18, %v3623_v6  ;;  %v2362_v34 = vsel %vm3662_vm12, 1.0, %v3575_v2  ;;  %v3765_v41 = vsub.f32 %v2361_v31, %v2361_v31  ;;  %v230_v45 = vand.u32 4294901760, %v3726_v32 }
  0x1e   :  { %vm3680_vm3 = vmpackc.low %vm3670_vm15, %vm3662_vm12  ;;  %v2363_v35 = vsel %vm3670_vm15, 1.0, %v3575_v2  ;;  %v3774_v43 = vsub.f32 %v2362_v34, %v2362_v34  ;;  %v3798_v48 = vsub.f32 %v3713_v27, %v3753_v38  ;;  %v43_v50 = vadd.s32 112, %v3613_v3 }
  0x1f   :  { %v4459_v20 = vsel %vm3680_vm3, 4294967295, %v4458_v20  ;;  %vm3685_vm4 = vmand %vm52_vm13, %vm69_vm14  ;;  %vm72_vm13 = vcmp.lt.s32.totalorder %v36_v18, %v3629_v8  ;;  %v3776_v44 = vsub.f32 %v2363_v35, %v2363_v35  ;;  %v44_v53 = vadd.s32 120, %v3613_v3 }
  0x20   :  { %3194 = vmatpush3.bf16.msk.msra.mxu0 %vm3680_vm3, %v3577_v16  ;;  %vm3698_vm9 = vmand %vm53_vm1, %vm70_vm2  ;;  %vm56_vm1 = vcmp.ge.s32.totalorder %v37_v21, %v3623_v6  ;;  %vm73_vm2 = vcmp.lt.s32.totalorder %v37_v21, %v3629_v8  ;;  %v2364_v46 = vsel %vm3685_vm4, 1.0, %v3575_v2  ;;  %vm4480_vm3 = vcmp.ge.s32.totalorder %v40_v30, %v3623_v6 }
  0x21   :  { %3195 = vmatprep.subr.bf16.mxu0 %v3574_v1  ;;  %vm3709_vm14 = vmpackc.low %vm3698_vm9, %vm3685_vm4  ;;  %v2365_v51 = vsel %vm3698_vm9, 1.0, %v3575_v2  ;;  %v237_v54 = vand.u32 4294901760, %v3765_v41  ;;  %v3819_v55 = vsub.f32 %v2364_v46, %v2364_v46  ;;  %v231_v57 = vsub.f32 %v3726_v32, %v230_v45 }
  0x22   :  { %v4465_v26 = vsel %vm3709_vm14, 4294967295, %v4464_v26  ;;  %vm3715_vm5 = vmand %vm54_vm6, %vm71_vm7  ;;  %vm57_vm6 = vcmp.ge.s32.totalorder %v38_v23, %v3623_v6  ;;  %vm74_vm7 = vcmp.lt.s32.totalorder %v38_v23, %v3629_v8  ;;  %v219_v59 = vand.u32 4294901760, %v3798_v48 }
  0x23   :  { %vm3728_vm0 = vmand %vm55_vm10, %vm72_vm13  ;;  %vm58_vm10 = vcmp.ge.s32.totalorder %v39_v29, %v3623_v6  ;;  %vm61_vm13 = vcmp.ge.s32.totalorder %v42_v40, %v3623_v6  ;;  %v244_v60 = vand.u32 4294901760, %v3774_v43  ;;  %v251_v61 = vand.u32 4294901760, %v3776_v44 }
  0x24   :  { %3197 = vmatpush3.bf16.msk.msra.mxu0 %vm3709_vm14, %v3577_v16  ;;  %vm3747_vm8 = vmpackc.low %vm3728_vm0, %vm3715_vm5  ;;  %vm75_vm14 = vcmp.lt.s32.totalorder %v39_v29, %v3629_v8  ;;  %v3838_v62 = vsub.f32 %v2365_v51, %v2365_v51  ;;  %v2366_v0 = vsel %vm3715_vm5, 1.0, %v3575_v2  ;;  %v238_v5 = vsub.f32 %v3765_v41, %v237_v54 }
  0x25   :  { %v4471_v36 = vsel %vm3747_vm8, 4294967295, %v4470_v36  ;;  %3198 = vmatprep.subr.bf16.mxu0 %v3574_v1  ;;  %vm3760_vm12 = vmand %vm56_vm1, %vm73_vm2  ;;  %vm76_vm1 = vcmp.lt.s32.totalorder %v40_v30, %v3629_v8  ;;  %v2367_v7 = vsel %vm3728_vm0, 1.0, %v3575_v2  ;;  %v232_v11 = vand.u32 4294901760, %v231_v57 }
  0x26   :  { %vm3767_vm15 = vmand %vm57_vm6, %vm74_vm7  ;;  %vm60_vm6 = vcmp.ge.s32.totalorder %v41_v37, %v3623_v6  ;;  %vm77_vm7 = vcmp.lt.s32.totalorder %v41_v37, %v3629_v8  ;;  %v2368_v9 = vsel %vm3760_vm12, 1.0, %v3575_v2  ;;  %v258_v12 = vand.u32 4294901760, %v3819_v55 }
  0x27   :  { %vm3790_vm2 = vmpackc.low %vm3767_vm15, %vm3760_vm12  ;;  %v2369_v13 = vsel %vm3767_vm15, 1.0, %v3575_v2  ;;  %v220_v17 = vsub.f32 %v3798_v48, %v219_v59  ;;  %v245_v18 = vsub.f32 %v3774_v43, %v244_v60  ;;  %v252_v19 = vsub.f32 %v3776_v44, %v251_v61 }
  0x28   :  { %3200 = vmatpush3.bf16.msk.msra.mxu0 %vm3747_vm8, %v3577_v16  ;;  %vm3801_vm4 = vmand %vm58_vm10, %vm75_vm14  ;;  %vm78_vm8 = vcmp.lt.s32.totalorder %v42_v40, %v3629_v8  ;;  %vm79_vm10 = vcmp.lt.s32.totalorder %v43_v50, %v3629_v8  ;;  %v239_v30 = vand.u32 4294901760, %v238_v5  ;;  %v265_v31 = vand.u32 4294901760, %v3838_v62 }
  0x29   :  { %3201 = vmatprep.subr.bf16.mxu0 %v3574_v1  ;;  %vm3813_vm11 = vmand %vm4480_vm3, %vm76_vm1  ;;  %vm80_vm1 = vcmp.lt.s32.totalorder %v44_v53, %v3629_v8  ;;  %v2370_v21 = vsel %vm3801_vm4, 1.0, %v3575_v2  ;;  %v3921_v33 = vsub.f32 %v2366_v0, %v2366_v0  ;;  %v3923_v8 = vsub.f32 %v2367_v7, %v2367_v7 }
  0x2a   :  { %vm3821_vm14 = vmand %vm60_vm6, %vm77_vm7  ;;  %v2371_v22 = vsel %vm3813_vm11, 1.0, %v3575_v2  ;;  %v3927_v34 = vsub.f32 %v2369_v13, %v2369_v13  ;;  %v3929_v35 = vsub.f32 %v2370_v21, %v2370_v21  ;;  %v259_v51 = vsub.f32 %v3819_v55, %v258_v12 }
  0x2b   :  { %vm3831_vm3 = vmand %vm61_vm13, %vm78_vm8  ;;  %vm62_vm8 = vcmp.ge.s32.totalorder %v43_v50, %v3623_v6  ;;  %vm63_vm13 = vcmp.ge.s32.totalorder %v44_v53, %v3623_v6  ;;  %v2372_v23 = vsel %vm3821_vm14, 1.0, %v3575_v2  ;;  %v3925_v6 = vsub.f32 %v2368_v9, %v2368_v9 }
  0x2c   :  { %3203 = vmatpush3.bf16.msk.msra.mxu0 %vm3790_vm2, %v3577_v16  ;;  %vm3845_vm9 = vmpackc.low %vm3813_vm11, %vm3801_vm4  ;;  %v2373_v24 = vsel %vm3831_vm3, 1.0, %v3575_v2  ;;  %v3931_v37 = vsub.f32 %v2371_v22, %v2371_v22  ;;  %v3936_v39 = vsub.f32 %v2372_v23, %v2372_v23  ;;  %v246_v50 = vand.u32 4294901760, %v245_v18 }
  0x2d   :  { %3204 = vmatprep.subr.bf16.mxu0 %v3574_v1  ;;  %vm3869_vm5 = vmpackc.low %vm3831_vm3, %vm3821_vm14  ;;  %v3938_v40 = vsub.f32 %v2373_v24, %v2373_v24  ;;  %v221_v52 = vand.u32 4294901760, %v220_v17  ;;  %v3954_v53 = vpack.c.bf16 %v239_v30, %v232_v11  ;;  %v253_v56 = vand.u32 4294901760, %v252_v19 }
  0x2e   :  { %vm3880_vm0 = vmand %vm62_vm8, %vm79_vm10  ;;  %v266_v57 = vsub.f32 %v3838_v62, %v265_v31  ;;  %v272_v58 = vand.u32 4294901760, %v3921_v33  ;;  %v279_v0 = vand.u32 4294901760, %v3923_v8  ;;  %v286_v5 = vand.u32 4294901760, %v3925_v6 }
  0x2f   :  { %vm3910_vm12 = vmand %vm63_vm13, %vm80_vm1  ;;  %v2374_v28 = vsel %vm3880_vm0, 1.0, %v3575_v2  ;;  %v293_v7 = vand.u32 4294901760, %v3927_v34  ;;  %v300_v9 = vand.u32 4294901760, %v3929_v35  ;;  %v307_v11 = vand.u32 4294901760, %v3931_v37 }
  0x30   :  { %3206 = vmatpush3.bf16.msk.msra.mxu0 %vm3845_vm9, %v3577_v16  ;;  %v2375_v29 = vsel %vm3910_vm12, 1.0, %v3575_v2  ;;  %vm3945_vm11 = vmpackc.low %vm3910_vm12, %vm3880_vm0  ;;  %v3949_v46 = vsub.f32 %v2374_v28, %v2374_v28  ;;  %v314_v13 = vand.u32 4294901760, %v3936_v39  ;;  %v321_v15 = vand.u32 4294901760, %v3938_v40 }
  0x31   :  { %3207 = vmatprep.subr.bf16.mxu0 %v3574_v1  ;;  %v3951_v49 = vsub.f32 %v2375_v29, %v2375_v29  ;;  %v3975_v19 = vpack.c.bf16 %v237_v54, %v230_v45  ;;  %v3981_v21 = vpack.c.bf16 %v251_v61, %v244_v60  ;;  %v3983_v22 = vpack.c.bf16 %v265_v31, %v258_v12 }
  0x32   :  { %v328_v17 = vand.u32 4294901760, %v3949_v46  ;;  %v3985_v23 = vpack.c.bf16 %v279_v0, %v272_v58  ;;  %v3987_v24 = vpack.c.bf16 %v293_v7, %v286_v5  ;;  %v3989_v25 = vpack.c.bf16 %v307_v11, %v300_v9 }
  0x33   :  { %v335_v18 = vand.u32 4294901760, %v3951_v49  ;;  %v260_v28 = vand.u32 4294901760, %v259_v51  ;;  %v267_v29 = vand.u32 4294901760, %v266_v57  ;;  %v3991_v30 = vpack.c.bf16 %v321_v15, %v314_v13 }
  0x34   :  { %3209 = vmatpush3.bf16.msk.msra.mxu0 %vm3869_vm5, %v3577_v16  ;;  %v3996_v54 = vpack.c.bf16 %v253_v56, %v246_v50  ;;  %v273_v60 = vsub.f32 %v3921_v33, %v272_v58  ;;  %v280_v61 = vsub.f32 %v3923_v8, %v279_v0  ;;  %vm4497_vm15 = vmmov 0  }
  0x35   :  { %3210 = vmatprep.subr.bf16.mxu0 %v3574_v1  ;;  %v3993_v45 = vpack.c.bf16 %v335_v18, %v328_v17  ;;  %v4003_v12 = vpack.c.bf16 %v267_v29, %v260_v28  ;;  %v294_v50 = vsub.f32 %v3927_v34, %v293_v7  ;;  %v301_v56 = vsub.f32 %v3929_v35, %v300_v9 }
  0x36   :  { %v274_v31 = vand.u32 4294901760, %v273_v60  ;;  %v281_v51 = vand.u32 4294901760, %v280_v61  ;;  %v308_v28 = vsub.f32 %v3931_v37, %v307_v11  ;;  %v315_v60 = vsub.f32 %v3936_v39, %v314_v13 }
  0x37   :  { %v295_v0 = vand.u32 4294901760, %v294_v50  ;;  %v302_v29 = vand.u32 4294901760, %v301_v56  ;;  %v322_v9 = vsub.f32 %v3938_v40, %v321_v15  ;;  %v329_v61 = vsub.f32 %v3949_v46, %v328_v17 }
  0x38   :  { %3212 = vmatpush3.bf16.msk.msra.mxu0 %vm3945_vm11, %v3577_v16  ;;  %v4011_v57 = vpack.c.bf16 %v281_v51, %v274_v31  ;;  %v309_v7 = vand.u32 4294901760, %v308_v28  ;;  %v316_v11 = vand.u32 4294901760, %v315_v60  ;;  %v4045_v56 = vpack.c.bf16 %v3776_v44, %v3774_v43 }
  0x39   :  { %3213 = vmatprep.subr.bf16.mxu0 %v3574_v1  ;;  %v323_v51 = vand.u32 4294901760, %v322_v9  ;;  %v330_v13 = vand.u32 4294901760, %v329_v61  ;;  %v4065_v43 = vpack.c.bf16 %v3927_v34, %v3925_v6  ;;  %v4071_v44 = vpack.c.bf16 %v3931_v37, %v3929_v35 }
  0x3a   :  { %v4023_v31 = vpack.c.bf16 %v309_v7, %v302_v29  ;;  %vm4498_vm6 = vnez %v4453_v14  ;;  %vm4499_vm7 = vnez %v4459_v20  ;;  %vm4500_vm4 = vnez %v4465_v26 }
  0x3b   :  { %2742 = vmatmul.mubr.f32.vlgmr.msra.gmra.mrb[0].mxu0 %v221_v52  ;;  %v287_v52 = vsub.f32 %v3925_v6, %v286_v5  ;;  %v4028_v50 = vpack.c.bf16 %v323_v51, %v316_v11  ;;  %vm4501_vm14 = vnez %v4471_v36  ;;  %vm782_vm10 = vcmask 1043456  }
  0x3c   :  { %3215 = vmatpush3.bf16.msra.mxu0 %v3954_v53  ;;  %2776 = vmatprep.mubr.msk.f32.mxu0 %vm4497_vm15, %v3575_v2  ;;  %vm778_vm1 = vcmask 31744  }
  0x3d   :  { %3216 = vmatprep.subr.bf16.mxu0 %v3574_v1  ;;  %v288_v58 = vand.u32 4294901760, %v287_v52  ;;  %v336_v52 = vsub.f32 %v3951_v49, %v335_v18  ;;  %v4038_v18 = vpack.c.bf16 %v3765_v41, %v3726_v32  ;;  %v4053_v32 = vpack.c.bf16 %v3838_v62, %v3819_v55 }
  0x3e   :  { %v4059_v41 = vpack.c.bf16 %v3923_v8, %v3921_v33  ;;  %v4077_v55 = vpack.c.bf16 %v3938_v40, %v3936_v39  ;;  %v4083_v62 = vpack.c.bf16 %v3951_v49, %v3949_v46 }
  0x3f   :  { %v4016_v5 = vpack.c.bf16 %v295_v0, %v288_v58  ;;  %v337_v15 = vand.u32 4294901760, %v336_v52 }
  0x40   :  { %3218 = vmatpush3.bf16.msra.mxu0 %v3996_v54 }
  0x41   :  { %3219 = vmatprep.subr.bf16.mxu0 %v3574_v1  ;;  %v4032_v17 = vpack.c.bf16 %v337_v15, %v330_v13 }
  0x44   :  { %3221 = vmatpush3.bf16.msra.mxu0 %v4003_v12 }
  0x45   :  { %3222 = vmatprep.subr.bf16.mxu0 %v3574_v1 }
  0x48   :  { %3224 = vmatpush3.bf16.msra.mxu0 %v4011_v57 }
  0x49   :  { %3225 = vmatprep.subr.bf16.mxu0 %v3574_v1 }
  0x4c   :  { %3227 = vmatpush3.bf16.msra.mxu0 %v4016_v5 }
  0x4d   :  { %3228 = vmatprep.subr.bf16.mxu0 %v3574_v1 }
  0x50   :  { %3230 = vmatpush3.bf16.msra.mxu0 %v4023_v31 }
  0x51   :  { %3231 = vmatprep.subr.bf16.mxu0 %v3574_v1 }
  0x54   :  { %3233 = vmatpush3.bf16.msra.mxu0 %v4028_v50 }
  0x55   :  { %3234 = vmatprep.subr.bf16.mxu0 %v3574_v1 }
  0x58   :  { %3236 = vmatpush3.bf16.msra.mxu0 %v4032_v17 }
  0x59   :  { %3237 = vmatprep.subr.bf16.mxu0 %v3574_v1 }
  0x5b   :  { %2777 = vmatmul.mubr.f32.vlgmr.msra.gmra.mrb[0].mxu0 %v3753_v38 }
  0x5c   :  { %3239 = vmatpush3.bf16.msra.mxu0 %v4038_v18  ;;  %2811 = vmatprep.mubr.msk.f32.mxu0 %vm4497_vm15, %v3575_v2 }
  0x5d   :  { %3240 = vmatprep.subr.bf16.mxu0 %v3574_v1 }
  0x60   :  { %3242 = vmatpush3.bf16.msra.mxu0 %v4045_v56 }
  0x61   :  { %3243 = vmatprep.subr.bf16.mxu0 %v3574_v1 }
  0x64   :  { %3245 = vmatpush3.bf16.msra.mxu0 %v4053_v32 }
  0x65   :  { %3246 = vmatprep.subr.bf16.mxu0 %v3574_v1 }
  0x68   :  { %3248 = vmatpush3.bf16.msra.mxu0 %v4059_v41 }
  0x69   :  { %3249 = vmatprep.subr.bf16.mxu0 %v3574_v1 }
  0x6c   :  { %3251 = vmatpush3.bf16.msra.mxu0 %v4065_v43 }
  0x6d   :  { %3252 = vmatprep.subr.bf16.mxu0 %v3574_v1 }
  0x70   :  { %3254 = vmatpush3.bf16.msra.mxu0 %v4071_v44 }
  0x71   :  { %3255 = vmatprep.subr.bf16.mxu0 %v3574_v1 }
  0x74   :  { %3257 = vmatpush3.bf16.msra.mxu0 %v4077_v55 }
  0x75   :  { %3258 = vmatprep.subr.bf16.mxu0 %v3574_v1 }
  0x78   :  { %3260 = vmatpush3.bf16.msra.mxu0 %v4083_v62 }
  0x79   :  { %3261 = vmatprep.subr.bf16.mxu0 %v3574_v1 }
  0x7b   :  { %2812 = vmatmul.mubr.f32.vlgmr.msra.gmra.mrb[0].mxu0 %v3798_v48  ;;  %v129_v48 = vmul.u32 32, %v3613_v3 }
  0x7c   :  { %3263 = vmatpush3.bf16.msk.msra.mxu0 %vm4498_vm6, %v3577_v16  ;;  %2846 = vmatprep.mubr.msk.f32.mxu0 %vm4497_vm15, %v3575_v2 }
  0x7d   :  { %3264 = vmatprep.subr.bf16.mxu0 %v3574_v1  ;;  %vm130_vm3 = vcmp.ge.s32.totalorder %v3615_v4, %v129_v48 }
  0x80   :  { %3266 = vmatpush3.bf16.msk.msra.mxu0 %vm4499_vm7, %v3577_v16 }
  0x81   :  { %3267 = vmatprep.subr.bf16.mxu0 %v3574_v1 }
  0x84   :  { %3269 = vmatpush3.bf16.msk.msra.mxu0 %vm4500_vm4, %v3577_v16 }
  0x85   :  { %3270 = vmatprep.subr.bf16.mxu0 %v3574_v1 }
  0x88   :  { %3272 = vmatpush3.bf16.msk.msra.mxu0 %vm4501_vm14, %v3577_v16 }
  0x89   :  { %3273 = vmatprep.subr.bf16.mxu0 %v3574_v1 }
  0x8c   :  { %3275 = vmatpush3.bf16.msk.msra.mxu0 %vm3790_vm2, %v3577_v16 }
  0x8d   :  { %3276 = vmatprep.subr.bf16.mxu0 %v3574_v1 }
  0x90   :  { %3278 = vmatpush3.bf16.msk.msra.mxu0 %vm3845_vm9, %v3577_v16 }
  0x91   :  { %3279 = vmatprep.subr.bf16.mxu0 %v3574_v1 }
  0x94   :  { %3281 = vmatpush3.bf16.msk.msra.mxu0 %vm3869_vm5, %v3577_v16 }
  0x95   :  { %3282 = vmatprep.subr.bf16.mxu0 %v3574_v1 }
  0x98   :  { %3284 = vmatpush3.bf16.msk.msra.mxu0 %vm3945_vm11, %v3577_v16 }
  0x99   :  { %3285 = vmatprep.subr.bf16.mxu0 %v3574_v1 }
  0x9b   :  { %2847 = vmatmul.mubr.f32.vlgmr.msra.gmra.mrb[0].mxu0 %v219_v59  ;;  %v131_v59 = vadd.s32 32, %v129_v48 }
  0x9c   :  { %3287 = vmatpush3.bf16.msra.mxu0 %v3975_v19  ;;  %2881 = vmatprep.mubr.msk.f32.mxu0 %vm4497_vm15, %v3575_v2 }
  0x9d   :  { %3288 = vmatprep.subr.bf16.mxu0 %v3574_v1  ;;  %vm132_vm8 = vcmp.lt.s32.totalorder %v3615_v4, %v131_v59 }
  0x9e   :  { %vm133_vm13 = vmand %vm130_vm3, %vm132_vm8 }
  0x9f   :  { %v4185_v33 = vsel %vm133_vm13, 1.0, %v3575_v2 }
  0xa0   :  { %3290 = vmatpush3.bf16.msra.mxu0 %v3981_v21  ;;  %2920 = vmatpush3.msk.msra.mxu1 %vm782_vm10, %v4185_v33  ;;  %v784_v3 = vsel %vm782_vm10, %v4185_v33, 0 }
  0xa1   :  { %3291 = vmatprep.subr.bf16.mxu0 %v3574_v1  ;;  %2924 = vmatprep.subr.mxu1 %v3575_v2 }
  0xa4   :  { %3293 = vmatpush3.bf16.msra.mxu0 %v3983_v22 }
  0xa5   :  { %3294 = vmatprep.subr.bf16.mxu0 %v3574_v1 }
  0xa8   :  { %3296 = vmatpush3.bf16.msra.mxu0 %v3985_v23 }
  0xa9   :  { %3297 = vmatprep.subr.bf16.mxu0 %v3574_v1 }
  0xac   :  { %3299 = vmatpush3.bf16.msra.mxu0 %v3987_v24 }
  0xad   :  { %3300 = vmatprep.subr.bf16.mxu0 %v3574_v1 }
  0xb0   :  { %3302 = vmatpush3.bf16.msra.mxu0 %v3989_v25 }
  0xb1   :  { %3303 = vmatprep.subr.bf16.mxu0 %v3574_v1 }
  0xb4   :  { %3305 = vmatpush3.bf16.msra.mxu0 %v3991_v30 }
  0xb5   :  { %3306 = vmatprep.subr.bf16.mxu0 %v3574_v1 }
  0xb8   :  { %3308 = vmatpush3.bf16.msra.mxu0 %v3993_v45 }
  0xb9   :  { %3309 = vmatprep.subr.bf16.mxu0 %v3574_v1 }
  0xbb   :  { %2882 = vmatmul.mubr.f32.vlgmr.msra.gmra.mrb[0].mxu0 %v3753_v38 }
  0xbc   :  { %3311 = vmatpush3.bf16.msk.msra.mxu0 %vm4498_vm6, %v3577_v16  ;;  %2916 = vmatprep.mubr.msk.f32.mxu0 %vm4497_vm15, %v3575_v2 }
  0xbd   :  { %3312 = vmatprep.subr.bf16.mxu0 %v3574_v1 }
  0xc0   :  { %3314 = vmatpush3.bf16.msk.msra.mxu0 %vm4499_vm7, %v3577_v16 }
  0xc1   :  { %3315 = vmatprep.subr.bf16.mxu0 %v3574_v1 }
  0xc4   :  { %3317 = vmatpush3.bf16.msk.msra.mxu0 %vm4500_vm4, %v3577_v16 }
  0xc5   :  { %3318 = vmatprep.subr.bf16.mxu0 %v3574_v1 }
  0xc8   :  { %3320 = vmatpush3.bf16.msk.msra.mxu0 %vm4501_vm14, %v3577_v16 }
  0xc9   :  { %3321 = vmatprep.subr.bf16.mxu0 %v3574_v1 }
  0xcc   :  { %3323 = vmatpush3.bf16.msk.msra.mxu0 %vm3790_vm2, %v3577_v16 }
  0xcd   :  { %3324 = vmatprep.subr.bf16.mxu0 %v3574_v1 }
  0xd0   :  { %3326 = vmatpush3.bf16.msk.msra.mxu0 %vm3845_vm9, %v3577_v16 }
  0xd1   :  { %3327 = vmatprep.subr.bf16.mxu0 %v3574_v1 }
  0xd4   :  { %3329 = vmatpush3.bf16.msk.msra.mxu0 %vm3869_vm5, %v3577_v16 }
  0xd5   :  { %3330 = vmatprep.subr.bf16.mxu0 %v3574_v1 }
  0xd8   :  { %3332 = vmatpush3.bf16.msk.msra.mxu0 %vm3945_vm11, %v3577_v16 }
  0xd9   :  { %3159 = vmatprep.subr.mxu0 %v3575_v2 }
  0xdb   :  { %2917 = vmatmul.mubr.f32.vlgmr.msra.gmra.mrb[0].mxu0 %v3753_v38  ;;  %v4195_v38 = vsub.f32 %v784_v3, %v784_v3 }
  0xdc   :  { %3161 = vmatprep.mubr.msk.f32.mxu0 %vm4497_vm15, %v3575_v2  ;;  %3160 = vmatpush3.msk.msra.mxu0 %vm782_vm10, %v4185_v33 }
  0xdd   :  { %3164 = vmatprep.subr.mxu0 %v3575_v2  ;;  %v4199_v35 = vand.u32 4294901760, %v4195_v38 }
  0xdf   :  { %v866_v40 = vsub.f32 %v4195_v38, %v4199_v35 }
  0xe1   :  { %v4203_v58 = vand.u32 4294901760, %v866_v40 }
 0x1ae   :  { %v773_v4 = vpop.f32.mrb[0].mxu0 }
 0x1af   :  { %v777_v8 = vmul.f32 0.03125, %v773_v4  ;;  %v2918_v6 = vpop.f32.mrb[1].mxu0 }
 0x1b1   :  { %v780_v34 = vsel %vm778_vm1, %v777_v8, 0 }
 0x1b2   :  { %v852_v37 = vand.u32 4294901760, %v780_v34 }
 0x1b4   :  { %v853_v39 = vsub.f32 %v780_v34, %v852_v37 }
 0x1b6   :  { %v854_v46 = vand.u32 4294901760, %v853_v39 }
 0x1b8   :  { %v855_v49 = vsub.f32 %v853_v39, %v854_v46 }
 0x1ba   :  { %v856_v0 = vand.u32 4294901760, %v855_v49 }
 0x1bc   :  { %2922 = vmatmul.mubr.f32.vlgmr.msra.gmra.mrb[0].mxu1 %v856_v0 }
 0x1bd   :  { %2925 = vmatpush3.msra.mxu1 %v4203_v58  ;;  %2926 = vmatprep.mubr.msk.f32.mxu1 %vm4497_vm15, %v3575_v2 }
 0x1be   :  { %2929 = vmatprep.subr.mxu1 %v3575_v2 }
 0x1c4   :  { %2927 = vmatmul.mubr.f32.vlgmr.msra.gmra.mrb[0].mxu1 %v852_v37 }
 0x1c5   :  { %2930 = vmatpush3.msra.mxu1 %v4195_v38  ;;  %2931 = vmatprep.mubr.msk.f32.mxu1 %vm4497_vm15, %v3575_v2 }
 0x1c6   :  { %2934 = vmatprep.subr.mxu1 %v3575_v2 }
 0x1cc   :  { %2932 = vmatmul.mubr.f32.vlgmr.msra.gmra.mrb[0].mxu1 %v853_v39 }
 0x1cd   :  { %2935 = vmatpush3.msk.msra.mxu1 %vm782_vm10, %v4185_v33  ;;  %2936 = vmatprep.mubr.msk.f32.mxu1 %vm4497_vm15, %v3575_v2 }
 0x1ce   :  { %2939 = vmatprep.subr.mxu1 %v3575_v2 }
 0x1d4   :  { %2937 = vmatmul.mubr.f32.vlgmr.msra.gmra.mrb[0].mxu1 %v854_v46 }
 0x1d5   :  { %2940 = vmatpush3.msra.mxu1 %v4199_v35  ;;  %2941 = vmatprep.mubr.msk.f32.mxu1 %vm4497_vm15, %v3575_v2 }
 0x1d6   :  { %2944 = vmatprep.subr.mxu1 %v3575_v2 }
 0x1dc   :  { %2942 = vmatmul.mubr.f32.vlgmr.msra.gmra.mrb[0].mxu1 %v852_v37 }
 0x1dd   :  { %2945 = vmatpush3.msk.msra.mxu1 %vm782_vm10, %v4185_v33  ;;  %2946 = vmatprep.mubr.msk.f32.mxu1 %vm4497_vm15, %v3575_v2 }
 0x1de   :  { %3333 = vmatprep.subr.bf16.mxu1 %v3574_v1 }
 0x1e4   :  { %2947 = vmatmul.mubr.f32.vlgmr.msra.gmra.mrb[0].mxu1 %v852_v37 }
 0x1e5   :  { %3335 = vmatpush3.bf16.msk.msra.mxu1 %vm4498_vm6, %v3577_v16  ;;  %2981 = vmatprep.mubr.msk.f32.mxu1 %vm4497_vm15, %v3575_v2 }
 0x1e6   :  { %3336 = vmatprep.subr.bf16.mxu1 %v3574_v1 }
 0x1e9   :  { %3338 = vmatpush3.bf16.msk.msra.mxu1 %vm4499_vm7, %v3577_v16 }
 0x1ea   :  { %3339 = vmatprep.subr.bf16.mxu1 %v3574_v1 }
 0x1ed   :  { %3341 = vmatpush3.bf16.msk.msra.mxu1 %vm4500_vm4, %v3577_v16 }
 0x1ee   :  { %3342 = vmatprep.subr.bf16.mxu1 %v3574_v1 }
 0x1f1   :  { %3344 = vmatpush3.bf16.msk.msra.mxu1 %vm4501_vm14, %v3577_v16 }
 0x1f2   :  { %3345 = vmatprep.subr.bf16.mxu1 %v3574_v1 }
 0x1f5   :  { %3347 = vmatpush3.bf16.msk.msra.mxu1 %vm3790_vm2, %v3577_v16 }
 0x1f6   :  { %3348 = vmatprep.subr.bf16.mxu1 %v3574_v1 }
 0x1f9   :  { %3350 = vmatpush3.bf16.msk.msra.mxu1 %vm3845_vm9, %v3577_v16 }
 0x1fa   :  { %3351 = vmatprep.subr.bf16.mxu1 %v3574_v1 }
 0x1fd   :  { %3353 = vmatpush3.bf16.msk.msra.mxu1 %vm3869_vm5, %v3577_v16 }
 0x1fe   :  { %3354 = vmatprep.subr.bf16.mxu1 %v3574_v1 }
 0x201   :  { %3356 = vmatpush3.bf16.msk.msra.mxu1 %vm3945_vm11, %v3577_v16 }
 0x202   :  { %3357 = vmatprep.subr.bf16.mxu1 %v3574_v1 }
 0x2b7   :  { %v1228_v28 = vpop.f32.mrb[0].mxu1 }
 0x2b8   :  { %v4262_v29 = vsub.f32 %v3713_v27, %v1228_v28  ;;  %v2948_v7 = vpop.f32.mrb[1].mxu1 }
 0x2ba   :  { %v1233_v60 = vmul.f32 %v4262_v29, %v4262_v29 }
 0x2bc   :  { %v4266_v9 = vand.u32 4294901760, %v1233_v60 }
 0x2be   :  { %v1316_v61 = vsub.f32 %v1233_v60, %v4266_v9 }
 0x2c0   :  { %v1317_v11 = vand.u32 4294901760, %v1316_v61 }
 0x2c2   :  { %v1318_v51 = vsub.f32 %v1316_v61, %v1317_v11 }
 0x2c4   :  { %v1319_v52 = vand.u32 4294901760, %v1318_v51 }
 0x2c6   :  { %2982 = vmatmul.mubr.f32.vlgmr.msra.gmra.mrb[2].mxu1 %v1319_v52 }
 0x2c7   :  { %3359 = vmatpush3.bf16.msra.mxu1 %v3954_v53  ;;  %3016 = vmatprep.mubr.msk.f32.mxu1 %vm4497_vm15, %v3575_v2 }
 0x2c8   :  { %3360 = vmatprep.subr.bf16.mxu1 %v3574_v1 }
 0x2cb   :  { %3362 = vmatpush3.bf16.msra.mxu1 %v3996_v54 }
 0x2cc   :  { %3363 = vmatprep.subr.bf16.mxu1 %v3574_v1 }
 0x2cf   :  { %3365 = vmatpush3.bf16.msra.mxu1 %v4003_v12 }
 0x2d0   :  { %3366 = vmatprep.subr.bf16.mxu1 %v3574_v1 }
 0x2d3   :  { %3368 = vmatpush3.bf16.msra.mxu1 %v4011_v57 }
 0x2d4   :  { %3369 = vmatprep.subr.bf16.mxu1 %v3574_v1 }
 0x2d7   :  { %3371 = vmatpush3.bf16.msra.mxu1 %v4016_v5 }
 0x2d8   :  { %3372 = vmatprep.subr.bf16.mxu1 %v3574_v1 }
 0x2db   :  { %3374 = vmatpush3.bf16.msra.mxu1 %v4023_v31 }
 0x2dc   :  { %3375 = vmatprep.subr.bf16.mxu1 %v3574_v1 }
 0x2df   :  { %3377 = vmatpush3.bf16.msra.mxu1 %v4028_v50 }
 0x2e0   :  { %3378 = vmatprep.subr.bf16.mxu1 %v3574_v1 }
 0x2e3   :  { %3380 = vmatpush3.bf16.msra.mxu1 %v4032_v17 }
 0x2e4   :  { %3381 = vmatprep.subr.bf16.mxu1 %v3574_v1 }
 0x2e6   :  { %3017 = vmatmul.mubr.f32.vlgmr.msra.gmra.mrb[2].mxu1 %v4266_v9 }
 0x2e7   :  { %3383 = vmatpush3.bf16.msra.mxu1 %v4038_v18  ;;  %3051 = vmatprep.mubr.msk.f32.mxu1 %vm4497_vm15, %v3575_v2 }
 0x2e8   :  { %3384 = vmatprep.subr.bf16.mxu1 %v3574_v1 }
 0x2eb   :  { %3386 = vmatpush3.bf16.msra.mxu1 %v4045_v56 }
 0x2ec   :  { %3387 = vmatprep.subr.bf16.mxu1 %v3574_v1 }
 0x2ef   :  { %3389 = vmatpush3.bf16.msra.mxu1 %v4053_v32 }
 0x2f0   :  { %3390 = vmatprep.subr.bf16.mxu1 %v3574_v1 }
 0x2f3   :  { %3392 = vmatpush3.bf16.msra.mxu1 %v4059_v41 }
 0x2f4   :  { %3393 = vmatprep.subr.bf16.mxu1 %v3574_v1 }
 0x2f7   :  { %3395 = vmatpush3.bf16.msra.mxu1 %v4065_v43 }
 0x2f8   :  { %3396 = vmatprep.subr.bf16.mxu1 %v3574_v1 }
 0x2fb   :  { %3398 = vmatpush3.bf16.msra.mxu1 %v4071_v44 }
 0x2fc   :  { %3399 = vmatprep.subr.bf16.mxu1 %v3574_v1 }
 0x2ff   :  { %3401 = vmatpush3.bf16.msra.mxu1 %v4077_v55 }
 0x300   :  { %3402 = vmatprep.subr.bf16.mxu1 %v3574_v1 }
 0x303   :  { %3404 = vmatpush3.bf16.msra.mxu1 %v4083_v62 }
 0x304   :  { %3405 = vmatprep.subr.bf16.mxu1 %v3574_v1 }
 0x306   :  { %3052 = vmatmul.mubr.f32.vlgmr.msra.gmra.mrb[2].mxu1 %v1316_v61 }
 0x307   :  { %3407 = vmatpush3.bf16.msk.msra.mxu1 %vm4498_vm6, %v3577_v16  ;;  %3086 = vmatprep.mubr.msk.f32.mxu1 %vm4497_vm15, %v3575_v2 }
 0x308   :  { %3408 = vmatprep.subr.bf16.mxu1 %v3574_v1 }
 0x30b   :  { %3410 = vmatpush3.bf16.msk.msra.mxu1 %vm4499_vm7, %v3577_v16 }
 0x30c   :  { %3411 = vmatprep.subr.bf16.mxu1 %v3574_v1 }
 0x30f   :  { %3413 = vmatpush3.bf16.msk.msra.mxu1 %vm4500_vm4, %v3577_v16 }
 0x310   :  { %3414 = vmatprep.subr.bf16.mxu1 %v3574_v1 }
 0x313   :  { %3416 = vmatpush3.bf16.msk.msra.mxu1 %vm4501_vm14, %v3577_v16 }
 0x314   :  { %3417 = vmatprep.subr.bf16.mxu1 %v3574_v1 }
 0x317   :  { %3419 = vmatpush3.bf16.msk.msra.mxu1 %vm3790_vm2, %v3577_v16 }
 0x318   :  { %3420 = vmatprep.subr.bf16.mxu1 %v3574_v1 }
 0x31b   :  { %3422 = vmatpush3.bf16.msk.msra.mxu1 %vm3845_vm9, %v3577_v16 }
 0x31c   :  { %3423 = vmatprep.subr.bf16.mxu1 %v3574_v1 }
 0x31f   :  { %3425 = vmatpush3.bf16.msk.msra.mxu1 %vm3869_vm5, %v3577_v16 }
 0x320   :  { %3426 = vmatprep.subr.bf16.mxu1 %v3574_v1 }
 0x323   :  { %3428 = vmatpush3.bf16.msk.msra.mxu1 %vm3945_vm11, %v3577_v16 }
 0x324   :  { %3429 = vmatprep.subr.bf16.mxu1 %v3574_v1 }
 0x326   :  { %3087 = vmatmul.mubr.f32.vlgmr.msra.gmra.mrb[2].mxu1 %v1317_v11 }
 0x327   :  { %3431 = vmatpush3.bf16.msra.mxu1 %v3975_v19  ;;  %3121 = vmatprep.mubr.msk.f32.mxu1 %vm4497_vm15, %v3575_v2 }
 0x328   :  { %3432 = vmatprep.subr.bf16.mxu1 %v3574_v1 }
 0x32b   :  { %3434 = vmatpush3.bf16.msra.mxu1 %v3981_v21 }
 0x32c   :  { %3435 = vmatprep.subr.bf16.mxu1 %v3574_v1 }
 0x32f   :  { %3437 = vmatpush3.bf16.msra.mxu1 %v3983_v22 }
 0x330   :  { %3438 = vmatprep.subr.bf16.mxu1 %v3574_v1 }
 0x333   :  { %3440 = vmatpush3.bf16.msra.mxu1 %v3985_v23  ;;  %v2480_v23 = vld [vmem:[%s4436_s2] ss:$0 sm:$0xff] }
 0x334   :  { %3441 = vmatprep.subr.bf16.mxu1 %v3574_v1 }
 0x337   :  { %3443 = vmatpush3.bf16.msra.mxu1 %v3987_v24 }
 0x338   :  { %3444 = vmatprep.subr.bf16.mxu1 %v3574_v1 }
 0x33b   :  { %3446 = vmatpush3.bf16.msra.mxu1 %v3989_v25 }
 0x33c   :  { %3447 = vmatprep.subr.bf16.mxu1 %v3574_v1 }
 0x33f   :  { %3449 = vmatpush3.bf16.msra.mxu1 %v3991_v30 }
 0x340   :  { %3450 = vmatprep.subr.bf16.mxu1 %v3574_v1 }
 0x343   :  { %3452 = vmatpush3.bf16.msra.mxu1 %v3993_v45 }
 0x344   :  { %3453 = vmatprep.subr.bf16.mxu1 %v3574_v1 }
 0x346   :  { %3122 = vmatmul.mubr.f32.vlgmr.msra.gmra.mrb[2].mxu1 %v4266_v9 }
 0x347   :  { %3455 = vmatpush3.bf16.msk.msra.mxu1 %vm4498_vm6, %v3577_v16  ;;  %3156 = vmatprep.mubr.msk.f32.mxu1 %vm4497_vm15, %v3575_v2 }
 0x348   :  { %3456 = vmatprep.subr.bf16.mxu1 %v3574_v1 }
 0x34b   :  { %3458 = vmatpush3.bf16.msk.msra.mxu1 %vm4499_vm7, %v3577_v16 }
 0x34c   :  { %3459 = vmatprep.subr.bf16.mxu1 %v3574_v1 }
 0x34f   :  { %3461 = vmatpush3.bf16.msk.msra.mxu1 %vm4500_vm4, %v3577_v16 }
 0x350   :  { %3462 = vmatprep.subr.bf16.mxu1 %v3574_v1 }
 0x353   :  { %3464 = vmatpush3.bf16.msk.msra.mxu1 %vm4501_vm14, %v3577_v16 }
 0x354   :  { %3465 = vmatprep.subr.bf16.mxu1 %v3574_v1 }
 0x357   :  { %3467 = vmatpush3.bf16.msk.msra.mxu1 %vm3790_vm2, %v3577_v16 }
 0x358   :  { %3468 = vmatprep.subr.bf16.mxu1 %v3574_v1 }
 0x35b   :  { %3470 = vmatpush3.bf16.msk.msra.mxu1 %vm3845_vm9, %v3577_v16 }
 0x35c   :  { %3471 = vmatprep.subr.bf16.mxu1 %v3574_v1 }
 0x35f   :  { %3473 = vmatpush3.bf16.msk.msra.mxu1 %vm3869_vm5, %v3577_v16 }
 0x360   :  { %3474 = vmatprep.subr.bf16.mxu1 %v3574_v1 }
 0x363   :  { %3476 = vmatpush3.bf16.msk.msra.mxu1 %vm3945_vm11, %v3577_v16  ;;  %v2479_v16 = vld [vmem:[%s4435_s1] ss:$0 sm:$0xff] }
 0x366   :  { %3157 = vmatmul.mubr.f32.vlgmr.msra.gmra.mrb[2].mxu1 %v4266_v9 }
 0x439   :  { %v1871_v14 = vpop.f32.mrb[2].mxu1 }
 0x43a   :  { %v1875_v20 = vmul.f32 0.03125, %v1871_v14  ;;  %v3158_v26 = vpop.f32.mrb[3].mxu1 }
 0x43c   :  { %v1876_v27 = vadd.f32 1e-05, %v1875_v20 }
 0x43e   :  { %3523 = vrsqrt.f32 %v1876_v27 }
 0x448   :  { %v3524_v36 = vpop.eup %3523 }
 0x449   :  { %v1879_v47 = vsel %vm778_vm1, %v3524_v36, 0 }
 0x44a   :  { %v1947_v63 = vand.u32 4294901760, %v1879_v47 }
 0x44c   :  { %v1948_v53 = vsub.f32 %v1879_v47, %v1947_v63 }
 0x44e   :  { %v1949_v10 = vand.u32 4294901760, %v1948_v53 }
 0x450   :  { %v1950_v19 = vsub.f32 %v1948_v53, %v1949_v10 }
 0x452   :  { %v1951_v21 = vand.u32 4294901760, %v1950_v19 }
 0x454   :  { %3162 = vmatmul.mubr.f32.vlgmr.msra.gmra.mrb[2].mxu0 %v1951_v21 }
 0x455   :  { %3165 = vmatpush3.msra.mxu0 %v4203_v58  ;;  %3166 = vmatprep.mubr.msk.f32.mxu0 %vm4497_vm15, %v3575_v2 }
 0x456   :  { %3169 = vmatprep.subr.mxu0 %v3575_v2 }
 0x45c   :  { %3167 = vmatmul.mubr.f32.vlgmr.msra.gmra.mrb[2].mxu0 %v1947_v63 }
 0x45d   :  { %3170 = vmatpush3.msra.mxu0 %v4195_v38  ;;  %3171 = vmatprep.mubr.msk.f32.mxu0 %vm4497_vm15, %v3575_v2 }
 0x45e   :  { %3174 = vmatprep.subr.mxu0 %v3575_v2 }
 0x464   :  { %3172 = vmatmul.mubr.f32.vlgmr.msra.gmra.mrb[2].mxu0 %v1948_v53 }
 0x465   :  { %3175 = vmatpush3.msk.msra.mxu0 %vm782_vm10, %v4185_v33  ;;  %3176 = vmatprep.mubr.msk.f32.mxu0 %vm4497_vm15, %v3575_v2 }
 0x466   :  { %3179 = vmatprep.subr.mxu0 %v3575_v2 }
 0x46c   :  { %3177 = vmatmul.mubr.f32.vlgmr.msra.gmra.mrb[2].mxu0 %v1949_v10 }
 0x46d   :  { %3180 = vmatpush3.msra.mxu0 %v4199_v35  ;;  %3181 = vmatprep.mubr.msk.f32.mxu0 %vm4497_vm15, %v3575_v2 }
 0x46e   :  { %3184 = vmatprep.subr.mxu0 %v3575_v2 }
 0x474   :  { %3182 = vmatmul.mubr.f32.vlgmr.msra.gmra.mrb[2].mxu0 %v1947_v63 }
 0x475   :  { %3185 = vmatpush3.msk.msra.mxu0 %vm782_vm10, %v4185_v33  ;;  %3186 = vmatprep.mubr.msk.f32.mxu0 %vm4497_vm15, %v3575_v2 }
 0x47c   :  { %3187 = vmatmul.mubr.f32.vlgmr.msra.gmra.mrb[2].mxu0 %v1947_v63 }
 0x54f   :  { %v2323_v1 = vpop.f32.mrb[2].mxu0 }
 0x550   :  { %v2327_v42 = vmul.f32 %v2323_v1, %v4262_v29  ;;  %v3188_v22 = vpop.f32.mrb[3].mxu0 }
 0x552   :  { %v2335_v24 = vmul.f32 %v2479_v16, %v2327_v42 }
 0x554   :  { %v2343_v25 = vadd.f32 %v2480_v23, %v2335_v24 }
 0x556   :  { %2344 = vst [vmem:[#allocation5] sm:$0xf] %v2343_v25 }
 0x557   :  { %3558 = shalt.err (!%p3555_p12)
}
 0x558   :  { %s3559_s4 = scalar_lea.hbm %s4437_s3, 64 }
 0x559   :  { %p3560_p13 = scmp.ne.s32.totalorder %s4437_s3, %s3559_s4  ;;  %p3563_p0 = scmp.lt.u32.totalorder %s3559_s4, %s4437_s3 }
 0x55b   :  { %p3565_p1 = pnand %p3563_p0, %p3560_p13 }
 0x55d   :  { %3568 = shalt.err (!%p3565_p1)
}
 0x55e   :  { %2354 = dma.vmem_to_hbm [thread:$0]  %s2352_s28, 64, %s4437_s3, [#allocation4]  }
 0x55f   :  { %3571 = dma.done.wait [#allocation4], 64  }
 0x560   :  { %3572 = vsyncadd [#allocation4], 4294967232 }
 0x561   :  { %2358 = vsyncpa [#allocation3], 1 }
 0x562   :  { %2359 = vsyncpa [#allocation4], 1 }

</bundles_post_ra>
